<compile_context>
chip_gen: v7x
topology: tpu7x:2x2x1
jax: 0.10.0
libtpu: 0.0.40
codegen_flags: <defaults>
</compile_context>

<pallas_src>
import math

import jax
import jax.numpy as jnp
from jax.experimental import pallas as pl
from jax.experimental.pallas import tpu as pltpu


# ----------------------------- helpers ------------------------------------- #

def _cdiv(a: int, b: int) -> int:
    return -(-a // b)


def _round_up(x: int, mult: int) -> int:
    return _cdiv(x, mult) * mult


def _sublane_multiple(itemsize: int) -> int:
    # f32 -> 8, bf16 -> 16, int8/fp8 -> 32 (sub-32-bit dtypes pack along sublanes).
    return max(8, 32 // max(int(itemsize), 1))


def _vmem_budget_bytes() -> int:
    """Double-buffered VMEM budget, derived per TPU generation."""
    cap = 64 * 1024 * 1024  # conservative default (v7x physical VMEM per TC)
    try:
        info = pltpu.get_tpu_info()
        cap = int(getattr(info, "vmem_capacity_bytes", cap)) or cap
    except Exception:
        pass
    # <= ~40% of physical, capped at 48 MiB (v5e/v6e: 48 MiB, v7x: ~25 MiB).
    return min(int(0.40 * cap), 48 * 1024 * 1024)


def _pick_tile_rows(rows: int, per_row_bytes: int, itemsize: int,
                    min_row_tiles: int) -> int:
    """Largest sublane-aligned row tile fitting the budget, with >= min_row_tiles
    grid steps along the row axis when the data permits."""
    sub = _sublane_multiple(itemsize)
    if rows <= sub:
        return int(rows)
    budget = _vmem_budget_bytes()
    tr = (budget // max(per_row_bytes, 1)) // sub * sub
    tr = max(sub, tr)
    # Keep enough grid steps for prefetch/writeback overlap and megacore sharding.
    step_cap = max(sub, _round_up(_cdiv(rows, max(min_row_tiles, 1)), sub))
    tr = min(tr, step_cap, _round_up(rows, sub))
    return int(tr)


# ----------------------------- kernels ------------------------------------- #

def _make_split_kernel(m: int, w: int):
    """Fast path: component index lives in the grid; body = m lane-slab copies.

    Refs: m inputs of (tr, w), output of (tr, m*w).  When w % 128 == 0 every
    slice offset i*w is 128-aligned -> unmasked, lane-dense stores.
    """
    def kernel(*refs):
        x_refs = refs[:m]
        o_ref = refs[m]
        for i in range(m):
            o_ref[:, i * w:(i + 1) * w] = x_refs[i][...]
    return kernel


def _make_fallback_kernel(m: int, n_divs: int, w: int):
    """Fallback (w not 128-aligned): full-width blocks, chunk slices in-kernel."""
    def kernel(*refs):
        x_refs = refs[:m]
        o_ref = refs[m]
        for comp in range(n_divs):
            for i in range(m):
                dst = (comp * m + i) * w
                src = comp * w
                o_ref[:, dst:dst + w] = x_refs[i][:, src:src + w]
    return kernel


# ----------------------------- wrapper ------------------------------------- #

def concatenate(xs, dim: int = -1, n_divs: int = 1) -> jax.Array:
    """Pallas implementation of the Concatenate module's forward pass."""
    # The PyTorch forward iterates `x`: accept a list/tuple of arrays, or a
    # single stacked array (iterated along axis 0).
    if isinstance(xs, (list, tuple)):
        xs = list(xs)
    else:
        xs = [xs[i] for i in range(xs.shape[0])]
    m = len(xs)
    assert m >= 1
    x0 = xs[0]
    for x in xs[1:]:
        assert x.shape == x0.shape and x.dtype == x0.dtype, \
            "all inputs must share shape and dtype"

    ndim = x0.ndim
    axis = dim % ndim
    shape = x0.shape
    a_dim = shape[axis]
    # TODO(synk): torch.chunk allows an uneven trailing chunk; only size % n_divs == 0 is supported.
    assert a_dim % n_divs == 0, "split axis must be divisible by n_divs"
    chunk_a = a_dim // n_divs

    # Fold everything after the concat axis into the per-(input, component)
    # contiguous run W.  All reshapes below are contiguous (no transposes).
    pre = int(math.prod(shape[:axis])) if axis > 0 else 1
    post = int(math.prod(shape[axis + 1:])) if axis + 1 < ndim else 1
    w = chunk_a * post              # one chunk's worth of contiguous elements
    c = n_divs * w                  # per-input row width
    rows = pre

    dtype = x0.dtype
    itemsize = dtype.itemsize
    x2ds = [x.reshape(rows, c) for x in xs]

    # Lane-dense fast path: component axis in the grid, 128-aligned slabs.
    split_components = (n_divs == 1) or (w % 128 == 0)

    if split_components:
        per_row_bytes = 4 * m * w * itemsize          # 2 bufs * (m inputs + output)
        min_row_tiles = _cdiv(8, max(n_divs, 1))      # >= 8 total grid steps
        tr = _pick_tile_rows(rows, per_row_bytes, itemsize, min_row_tiles)
        grid = (_cdiv(rows, tr), n_divs)
        kernel = _make_split_kernel(m, w)
        in_specs = [pl.BlockSpec((tr, w), lambda r, comp: (r, comp))
                    for _ in range(m)]
        out_specs = pl.BlockSpec((tr, m * w), lambda r, comp: (r, comp))
        dims = ("parallel", "parallel")
    else:
        # Non-lane-aligned chunks: full-width blocks, masked in-kernel slices.
        # TODO(synk): for tiny chunks a plain XLA concat may match/beat this path.
        per_row_bytes = 4 * m * c * itemsize
        tr = _pick_tile_rows(rows, per_row_bytes, itemsize, 8)
        grid = (_cdiv(rows, tr),)
        kernel = _make_fallback_kernel(m, n_divs, w)
        in_specs = [pl.BlockSpec((tr, c), lambda r: (r, 0)) for _ in range(m)]
        out_specs = pl.BlockSpec((tr, m * c), lambda r: (r, 0))
        dims = ("parallel",)

    vmem_limit = int(per_row_bytes * tr + 4 * 1024 * 1024)  # footprint + headroom

    out2d = pl.pallas_call(
        kernel,
        out_shape=jax.ShapeDtypeStruct((rows, m * c), dtype),
        grid_spec=pltpu.PrefetchScalarGridSpec(
            num_scalar_prefetch=0,
            grid=grid,
            in_specs=in_specs,
            out_specs=out_specs,
        ),
        compiler_params=pltpu.CompilerParams(
            dimension_semantics=dims,
            vmem_limit_bytes=vmem_limit,
        ),
    )(*x2ds)

    out_shape_final = shape[:axis] + (m * a_dim,) + shape[axis + 1:]
    return out2d.reshape(out_shape_final)


def concatenate_ref(xs, dim: int = -1, n_divs: int = 1) -> jax.Array:
    """Pure-JAX reference mirroring the PyTorch module."""
    if isinstance(xs, (list, tuple)):
        xs = list(xs)
    else:
        xs = [xs[i] for i in range(xs.shape[0])]
    splits = [jnp.split(x_i, n_divs, axis=dim) for x_i in xs]
    components = [jnp.concatenate([s[comp] for s in splits], axis=dim)
                  for comp in range(n_divs)]
    return jnp.concatenate(components, axis=dim)


if __name__ == "__main__":
    key = jax.random.PRNGKey(0)
    k1, k2, k3, k4, k5, k6, k7 = jax.random.split(key, 7)

    # Case 1: lane-aligned fast path (chunk = 128), two inputs, dim=-1, n_divs=4.
    a = jax.random.normal(k1, (2, 8, 512), dtype=jnp.float32)
    b = jax.random.normal(k2, (2, 8, 512), dtype=jnp.float32)
    out = jax.block_until_ready(concatenate([a, b], dim=-1, n_divs=4))
    ref = concatenate_ref([a, b], dim=-1, n_divs=4)
    assert out.shape == (2, 8, 1024)
    assert jnp.array_equal(out, ref), "mismatch vs reference (case 1)"

    # Case 2: dim=1 (non-last axis), n_divs=1 — no moveaxis, contiguous reshape
    # makes W = 32*8 = 256 (lane-aligned fast path).
    c0 = jax.random.normal(k3, (2, 32, 8), dtype=jnp.float32)
    c1 = jax.random.normal(k4, (2, 32, 8), dtype=jnp.float32)
    out2 = jax.block_until_ready(concatenate([c0, c1], dim=1, n_divs=1))
    ref2 = concatenate_ref([c0, c1], dim=1, n_divs=1)
    assert out2.shape == (2, 64, 8)
    assert jnp.array_equal(out2, ref2), "mismatch vs reference (case 2)"

    # Case 3: tiny non-aligned chunks (chunk = 8) + overhanging last row block
    # (exercises the fallback slice kernel and the cdiv grid).
    ds = [jax.random.normal(k, (3, 20, 32), dtype=jnp.float32)
          for k in jax.random.split(k5, 3)]
    out3 = jax.block_until_ready(concatenate(ds, dim=-1, n_divs=4))
    ref3 = concatenate_ref(ds, dim=-1, n_divs=4)
    assert out3.shape == (3, 20, 96)
    assert jnp.array_equal(out3, ref3), "mismatch vs reference (case 3)"

    # Case 4: bf16 (exercises dtype-specific sublane rounding), n_divs=2 fast path.
    e0 = jax.random.normal(k6, (2, 64, 256), dtype=jnp.bfloat16)
    e1 = jax.random.normal(k7, (2, 64, 256), dtype=jnp.bfloat16)
    out4 = jax.block_until_ready(concatenate([e0, e1], dim=-1, n_divs=2))
    ref4 = concatenate_ref([e0, e1], dim=-1, n_divs=2)
    assert out4.shape == (2, 64, 512) and out4.dtype == jnp.bfloat16
    assert jnp.array_equal(out4, ref4), "mismatch vs reference (case 4)"

    print("KERNEL_OK")
</pallas_src>

<mosaic_0001>
module attributes {stable_mosaic.version = 11 : i64} {
  func.func @kernel(%arg0: i32, %arg1: i32, %arg2: memref<8x128xf32, #tpu.memory_space<vmem>>, %arg3: memref<8x128xf32, #tpu.memory_space<vmem>>, %arg4: memref<8x256xf32, #tpu.memory_space<vmem>>) attributes {dimension_semantics = [#tpu.dimension_semantics<parallel>, #tpu.dimension_semantics<parallel>], iteration_bounds = array<i64: 2, 4>, scalar_prefetch = 0 : i64, scratch_operands = 0 : i64, tpu.core_type = #tpu.core_type<tc>, window_params = [{transform_indices = @transform_0, window_bounds = array<i64: 8, 128>}, {transform_indices = @transform_1, window_bounds = array<i64: 8, 128>}, {transform_indices = @transform_2, window_bounds = array<i64: 8, 256>}]} {
    %c0 = arith.constant 0 : index
    %c0_0 = arith.constant 0 : index
    %0 = vector.load %arg2[%c0, %c0_0] : memref<8x128xf32, #tpu.memory_space<vmem>>, vector<8x128xf32>
    %c0_1 = arith.constant 0 : index
    %c0_2 = arith.constant 0 : index
    %1 = vector.load %arg4[%c0_1, %c0_2] : memref<8x256xf32, #tpu.memory_space<vmem>>, vector<8x128xf32>
    tpu.vector_store %arg4[%c0_1, %c0_2], %0 {strides = array<i32>} : memref<8x256xf32, #tpu.memory_space<vmem>>, vector<8x128xf32>,
    %c0_3 = arith.constant 0 : index
    %c0_4 = arith.constant 0 : index
    %2 = vector.load %arg3[%c0_3, %c0_4] : memref<8x128xf32, #tpu.memory_space<vmem>>, vector<8x128xf32>
    %c0_5 = arith.constant 0 : index
    %c128 = arith.constant 128 : index
    %3 = vector.load %arg4[%c0_5, %c128] : memref<8x256xf32, #tpu.memory_space<vmem>>, vector<8x128xf32>
    tpu.vector_store %arg4[%c0_5, %c128], %2 {strides = array<i32>} : memref<8x256xf32, #tpu.memory_space<vmem>>, vector<8x128xf32>,
    return
  }
  func.func @transform_0(%arg0: i32, %arg1: i32) -> (i32, i32) {
    %c0_i32 = arith.constant 0 : i32
    return %arg0, %arg1 : i32, i32
  }
  func.func @transform_1(%arg0: i32, %arg1: i32) -> (i32, i32) {
    %c0_i32 = arith.constant 0 : i32
    return %arg0, %arg1 : i32, i32
  }
  func.func @transform_2(%arg0: i32, %arg1: i32) -> (i32, i32) {
    %c0_i32 = arith.constant 0 : i32
    return %arg0, %arg1 : i32, i32
  }
}

</mosaic_0001>

<bundles_post_ra>
// kernel: tpu_custom_call.1
= control target key start
LH: loop header
LB: loop body
LE: loop exit
PB: predicated region body
PF: predicated region fallthrough
CT: control target
= control target key end

     0   :  { %7 = vsyncpa [#allocation3], 0  ;;  %s882_s0 = inlined_call_operand.hbm [shape: f32[16,512], index: 0, kind: input, shape index: {}]   ;;  %s883_s1 = inlined_call_operand.hbm [shape: f32[16,512], index: 1, kind: input, shape index: {}]   ;;  %s884_s2 = inlined_call_operand.hbm [shape: f32[16,1024], index: 2, kind: output, shape index: {}]  }
   0x1   :  { %9 = vsyncpa [#allocation3 + $0x1], 0 }
   0x2   :  { %10 = vsyncpa [#allocation6], 0 }
   0x3   :  { %12 = vsyncpa [#allocation6 + $0x1], 0 }
   0x4   :  { %13 = vsyncpa [#allocation4], 0 }
   0x5   :  { %15 = vsyncpa [#allocation4 + $0x1], 0  ;;  %s636_s9 = smov 0   ;;  %s638_s10 = smov 0  }
   0x6   :  { %s640_s11 = smov 0   ;;  %s642_s12 = smov 0  }
   0x7   :  { %s644_s13 = smov 0   ;;  %s646_s14 = smov 0  }
   0x8   :  { %s648_s15 = smov 0   ;;  %s650_s16 = smov 0  }
   0x9 LB: > { %s351_s17 = sadd.s32 4294967295, %s616_s16   ;;  %s352_s18 = sadd.s32 4294967294, %s616_s16   ;;  %s616_s16 = sphi %s650_s16, %s21_s16   ;;  %s612_s15 = sphi %s648_s15, %s907_s15   ;;  %s608_s14 = sphi %s646_s14, %s906_s14   ;;  %s604_s13 = sphi %s644_s13, %s905_s13   ;;  %s600_s12 = sphi %s642_s12, %s904_s12   ;;  %s596_s11 = sphi %s640_s11, %s903_s11   ;;  %s592_s10 = sphi %s638_s10, %s902_s10   ;;  %s588_s9 = sphi %s636_s9, %s901_s9  }
   0xa   : > { %s30_s19 = sadd.s32 1, %s608_s14  ;;  %s33_s20 = sadd.s32 1, %s612_s15 }
   0xb   : > { %p31_p0 = scmp.ge.s32.totalorder %s30_s19, 4  ;;  %s42_s21 = sadd.s32 1, %s596_s11 }
   0xc   : > { %p49_p1 = scmp.ne.s32.totalorder %s596_s11, %s592_s10  ;;  %p50_p2 = scmp.eq.s32.totalorder %s616_s16, 0 }
   0xd   : > { %s909_s19 = smov (%p31_p0, %s30_s19), 0  ;;  %s911_s20 = smov (!%p31_p0, %s33_s20), %s612_s15 }
   0xe   : > { %s38_s22 = ssub.s32 %s608_s14, %s909_s19  ;;  %p689_p3 = por %p50_p2, %p49_p1 }
   0xf   : > { %p35_p4 = scmp.ge.s32.totalorder %s911_s20, 2  ;;  %p55_p5 = scmp.ne.s32.totalorder %s592_s10, %s588_s9 }
  0x10   : > { %p56_p6 = scmp.eq.s32.totalorder %s351_s17, 0  ;;  %p109_p7 = scmp.eq.s32.totalorder %s351_s17, 7 }
  0x11   : > { %s913_s20 = smov (%p35_p4, %s911_s20), 0  ;;  %p115_p10 = scmp.eq.s32.totalorder %s352_s18, 7 }
  0x12   : > { %p697_p8 = por %p56_p6, %p55_p5  ;;  %p701_p9 = por %p109_p7, %p49_p1 }
  0x13   : > { %s37_s26 = ssub.s32 %s612_s15, %s913_s20  ;;  %p707_p12 = por %p115_p10, %p55_p5 }
  0x14   : > { %s889_s24 = scalar_select %p697_p8, 1, 0 }
  0x15   : > { %s890_s25 = scalar_select %p701_p9, 1, 0 }
  0x16   : > { %s39_s27 = sor.u32 %s38_s22, %s37_s26  ;;  %p388_p13 = scmp.lt.s32.totalorder %s616_s16, 8 }
  0x17   : > { %p40_p11 = scmp.eq.s32.totalorder %s39_s27, 0  ;;  %s713_s29 = sand.u32 1, %s596_s11  }
  0x18   : > { %s891_s28 = scalar_select %p707_p12, 1, 0 }
  0x19   : > { %s716_s30 = scalar_select %p40_p11, %s596_s11, %s42_s21  }
  0x1a   : > { %s885_s3 = sshll.u32 %s713_s29, 3  ;;  %s356_s4 = sshll.u32 %s612_s15, 2 }
  0x1b   : > { %s721_s5 = sadd.s32 %s608_s14, %s356_s4  ;;  %s139_s6 = scalar_lea.vmem [#allocation2], %s885_s3 }
  0x1c   : > { %s148_s7 = sshll.u32 %s139_s6, 4  ;;  %s357_s8 = sshll.u32 %s721_s5, 7  ;;  %s726_s7 = int_to_ptr.vmem [resolvable:$true] %s148_s7 }
  0x1d   : > { %s733_s22 = scalar_lea.hbm %s882_s0, %s357_s8  ;;  %p737_p0 = pnand %p388_p13, %p689_p3 }
  0x1e   : > { %s136_s26 = scalar_lea.sflag [#allocation3], %s713_s29  ;;  %s454_s27 = scalar_lea.hbm %s733_s22, 128 }
  0x1f   : > { %p455_p4 = scmp.ne.s32.totalorder %s733_s22, %s454_s27  ;;  %p456_p5 = pneg %p737_p0 }
  0x20   : > { %s459_s6 = scalar_lea.hbm %s882_s0, 1024  ;;  %p460_p3 = scmp.lt.u32.totalorder %s733_s22, %s882_s0 }
  0x21   : > { %p457_p6 = pnand %p456_p5, %p455_p4  ;;  %p461_p10 = scmp.lt.u32.totalorder %s459_s6, %s454_s27 }
  0x22   : > { %p463_p13 = scmp.lt.u32.totalorder %s454_s27, %s733_s22 }
  0x23   : > { %p458_p7 = pneg %p457_p6  ;;  %p462_p11 = por %p461_p10, %p460_p3 }
  0x25   : > { %p464_p1 = por %p463_p13, %p462_p11 }
  0x27   : > { %p465_p2 = pnand %p464_p1, %p458_p7 }
  0x29   : > { %468 = shalt.err (!%p465_p2)
}
  0x2a   : > { %s469_s3 = scalar_lea.vmem %s726_s7, 128  ;;  %s618_s23 = smov [#allocation2]  }
  0x2b   : > { %p470_p4 = scmp.ne.s32.totalorder %s726_s7, %s469_s3  ;;  %s474_s4 = sshll.u32 %s618_s23, 4  ;;  %s475_s4 = int_to_ptr.vmem [resolvable:$false] %s474_s4 }
  0x2c   : > { %s476_s17 = scalar_lea.vmem %s475_s4, 256  ;;  %p477_p9 = scmp.lt.s32.totalorder %s726_s7, %s475_s4 }
  0x2d   : > { %p472_p6 = pnand %p470_p4, %p456_p5  ;;  %p478_p3 = scmp.lt.s32.totalorder %s476_s17, %s469_s3 }
  0x2f   : > { %p473_p12 = pneg %p472_p6  ;;  %p479_p10 = por %p478_p3, %p477_p9 }
  0x31   : > { %p480_p11 = pnand %p479_p10, %p473_p12 }
  0x33   : > { %483 = shalt.err (!%p480_p11)
}
  0x34   : > { %380 = dma.hbm_to_vmem [thread:$0]  (!%p737_p0), %s733_s22, 128, %s726_s7, %s136_s26  }
  0x35   : > { %p893_p1 = scmp.lt.s32.totalorder %s616_s16, 9  ;;  %p894_p2 = scmp.ge.s32.totalorder %s616_s16, 1 }
  0x36   : > { %s782_s18 = scalar_lea.hbm %s883_s1, %s357_s8  ;;  %s896_s23 = sshll.u32 %s713_s29, 3 }
  0x37   : > { %p773_p7 = pnand %p894_p2, %p893_p1  ;;  %s159_s4 = scalar_lea.vmem [#allocation5], %s896_s23 }
  0x38   : > { %s168_s17 = sshll.u32 %s159_s4, 4  ;;  %s156_s7 = scalar_lea.sflag [#allocation6], %s713_s29  ;;  %s169_s17 = int_to_ptr.vmem [resolvable:$true] %s168_s17 }
  0x39   : > { %s895_s27 = scalar_select %p773_p7, 1, 0 }
  0x3a   : > { %s484_s22 = scalar_lea.hbm %s782_s18, 128  ;;  %s489_s8 = scalar_lea.hbm %s883_s1, 1024 }
  0x3b   : > { %p485_p9 = scmp.ne.s32.totalorder %s782_s18, %s484_s22  ;;  %p490_p4 = scmp.lt.u32.totalorder %s782_s18, %s883_s1 }
  0x3c   : > { %p491_p6 = scmp.lt.u32.totalorder %s489_s8, %s484_s22  ;;  %p493_p10 = scmp.lt.u32.totalorder %s484_s22, %s782_s18 }
  0x3d   : > { %p487_p12 = pnand %p485_p9, %p456_p5 }
  0x3e   : > { %p492_p3 = por %p491_p6, %p490_p4 }
  0x3f   : > { %p488_p13 = pneg %p487_p12 }
  0x40   : > { %p494_p11 = por %p493_p10, %p492_p3 }
  0x42   : > { %p495_p1 = pnand %p494_p11, %p488_p13 }
  0x44   : > { %498 = shalt.err (!%p495_p1)
}
  0x45   : > { %s499_s29 = scalar_lea.vmem %s169_s17, 128  ;;  %s619_s23 = smov [#allocation5]  }
  0x46   : > { %p500_p2 = scmp.ne.s32.totalorder %s169_s17, %s499_s29  ;;  %s504_s4 = sshll.u32 %s619_s23, 4  ;;  %s505_s4 = int_to_ptr.vmem [resolvable:$false] %s504_s4 }
  0x47   : > { %s506_s5 = scalar_lea.vmem %s505_s4, 256  ;;  %p507_p8 = scmp.lt.s32.totalorder %s169_s17, %s505_s4 }
  0x48   : > { %p502_p9 = pnand %p500_p2, %p456_p5  ;;  %p508_p7 = scmp.lt.s32.totalorder %s506_s5, %s499_s29 }
  0x4a   : > { %p503_p12 = pneg %p502_p9  ;;  %p509_p4 = por %p508_p7, %p507_p8 }
  0x4c   : > { %p510_p6 = pnand %p509_p4, %p503_p12 }
  0x4e   : > { %513 = shalt.err (!%p510_p6)
}
  0x4f   : > { %383 = dma.hbm_to_vmem [thread:$0]  (!%p737_p0), %s782_s18, 128, %s169_s17, %s156_s7  }
  0x50   : > { %p897_p13 = scmp.ne.s32.totalorder %s895_s27, 0 }
  0x51   : > { %s809_s22 = sand.u32 (!%p897_p13), 1, %s592_s10   ;;  %p898_p5 = scmp.ne.s32.totalorder (!%p897_p13), %s889_s24, 0 }
  0x52   : > { %177 = sbr.rel (%p897_p13) target bundleno = 120 (0x78), region = 28  ;;  %s362_s26 = sshll.u32 (!%p897_p13), %s809_s22, 3 }
  0x53   : > { %s180_s8 = scalar_lea.sflag (!%p897_p13), [#allocation3], %s809_s22  ;;  %s183_s3 = scalar_lea.vmem (!%p897_p13), [#allocation2], %s362_s26 }
  0x59   : > { %575 = dma.done.wait (%p898_p5), %s180_s8, 128  }
  0x5a   : > { %577 = vsyncadd (%p898_p5), %s180_s8, 4294967168  ;;  %s189_s21 = scalar_lea.sflag [#allocation6], %s809_s22  ;;  %s192_s18 = scalar_lea.vmem [#allocation5], %s362_s26 }
  0x5b   : > { %579 = dma.done.wait (%p898_p5), %s189_s21, 128  }
  0x5c   : > { %581 = vsyncadd (%p898_p5), %s189_s21, 4294967168  ;;  %s364_s27 = sshll.u32 %s809_s22, 4  ;;  %s366_s17 = sshll.u32 %s600_s12, 1  ;;  %v219_v0 = vld [vmem:[%s183_s3] sm:$0xff]  ;;  %v221_v1 = vld [vmem:[%s192_s18] sm:$0xff] }
  0x5d   : > { %s367_s7 = sshll.u32 %s604_s13, 3  ;;  %s217_s6 = scalar_lea.vmem [#allocation7], %s364_s27 }
  0x5e   : > { %s240_s29 = sshll.u32 %s217_s6, 4  ;;  %s236_s23 = sadd.s32 %s367_s7, %s366_s17  ;;  %220 = vst [vmem:[%s217_s6] sm:$0xff] %v219_v0  ;;  %222 = vst [vmem:[%s217_s6 + $0x8] sm:$0xff] %v221_v1  ;;  %s825_s29 = int_to_ptr.vmem [resolvable:$true] %s240_s29 }
  0x5f   : > { %s368_s4 = sshll.u32 %s236_s23, 7  ;;  %s224_s12 = scalar_lea.sflag [#allocation4], %s809_s22 }
  0x60   : > { %s830_s24 = scalar_lea.hbm %s884_s2, %s368_s4  ;;  %s514_s13 = scalar_lea.vmem %s825_s29, 256 }
  0x61   : > { %p515_p8 = scmp.ne.s32.totalorder %s825_s29, %s514_s13  ;;  %p899_p0 = scmp.ne.s32.totalorder %s890_s25, 0 }
  0x62   : > { %s620_s8 = smov [#allocation7]  }
  0x63   : > { %p516_p7 = pnand %p515_p8, %p899_p0  ;;  %s518_s21 = sshll.u32 %s620_s8, 4  ;;  %s519_s21 = int_to_ptr.vmem [resolvable:$false] %s518_s21 }
  0x64   : > { %s520_s27 = scalar_lea.vmem %s519_s21, 512  ;;  %p521_p10 = scmp.lt.s32.totalorder %s825_s29, %s519_s21 }
  0x65   : > { %p517_p3 = pneg %p516_p7  ;;  %p522_p11 = scmp.lt.s32.totalorder %s520_s27, %s514_s13 }
  0x67   : > { %p523_p1 = por %p522_p11, %p521_p10 }
  0x69   : > { %p524_p2 = pnand %p523_p1, %p517_p3 }
  0x6b   : > { %527 = shalt.err (!%p524_p2)
}
  0x6c   : > { %s528_s22 = scalar_lea.hbm %s830_s24, 256  ;;  %s532_s17 = scalar_lea.hbm %s884_s2, 2048 }
  0x6d   : > { %p529_p9 = scmp.ne.s32.totalorder %s830_s24, %s528_s22  ;;  %p533_p6 = scmp.lt.u32.totalorder %s830_s24, %s884_s2 }
  0x6e   : > { %p534_p13 = scmp.lt.u32.totalorder %s532_s17, %s528_s22  ;;  %p536_p8 = scmp.lt.u32.totalorder %s528_s22, %s830_s24 }
  0x6f   : > { %p530_p12 = pnand %p529_p9, %p899_p0 }
  0x70   : > { %p535_p5 = por %p534_p13, %p533_p6 }
  0x71   : > { %p531_p4 = pneg %p530_p12 }
  0x72   : > { %p537_p7 = por %p536_p8, %p535_p5 }
  0x74   : > { %p538_p3 = pnand %p537_p7, %p531_p4 }
  0x76   : > { %541 = shalt.err (!%p538_p3)
}
  0x77   : > { %375 = dma.vmem_to_hbm [thread:$0]  (%p899_p0), %s825_s29, 256, %s830_s24, %s224_s12  }
  0x78 PF: > { %p389_p10 = scmp.ge.s32.totalorder %s616_s16, 2  ;;  %s252_s23 = sand.u32 1, %s588_s9  }
  0x79   : > { %p900_p11 = scmp.ne.s32.totalorder %s891_s28, 0  ;;  %s253_s4 = scalar_lea.sflag [#allocation4], %s252_s23 }
  0x7b   : > { %p385_p1 = pnand %p389_p10, %p900_p11 }
  0x7d   : > { %583 = dma.done.wait (!%p385_p1), %s253_s4, 256  }
  0x7e   : > { %585 = vsyncadd (!%p385_p1), %s253_s4, 4294967040  ;;  %s21_s16 = sadd.s32 1, %s616_s16   ;;  %s901_s9 = smov %s592_s10 }
  0x7f   : > { %p18_p2 = scmp.ge.s32.totalorder %s21_s16, 10   ;;  %s902_s10 = smov %s596_s11 }
  0x80   : > { %s903_s11 = smov %s716_s30  ;;  %s904_s12 = smov %s608_s14 }
  0x81   : > { %s905_s13 = smov %s612_s15  ;;  %s906_s14 = smov %s909_s19 }
  0x82   : > { %s907_s15 = smov %s913_s20  ;;  %20 = sbr.rel (!%p18_p2) target bundleno = 9 (0x9), region = 86 }
  0x89   :  { %258 = vsyncpa [#allocation3], 1 }
  0x8a   :  { %260 = vsyncpa [#allocation3 + $0x1], 1 }
  0x8b   :  { %261 = vsyncpa [#allocation6], 1 }
  0x8c   :  { %263 = vsyncpa [#allocation6 + $0x1], 1 }
  0x8d   :  { %264 = vsyncpa [#allocation4], 1 }
  0x8e   :  { %266 = vsyncpa [#allocation4 + $0x1], 1 }

</bundles_post_ra>
